<compile_context>
chip_gen: v7x
topology: tpu7x:2x2x1
jax: 0.10.0
libtpu: 0.0.40
codegen_flags: <defaults>
</compile_context>

<pallas_src>
import functools

import jax
import jax.numpy as jnp
from jax.experimental import pallas as pl
from jax.experimental.pallas import tpu as pltpu

NEG_SLOPE = 0.01  # torch.nn.LeakyReLU default


def _leaky(x):
    # max(x, 0.01*x) == LeakyReLU(0.01); one VALU op cheaper than cmp+select.
    return jnp.maximum(x, NEG_SLOPE * x)


def _round_up(n, m):
    return ((n + m - 1) // m) * m


# --------------------------------- kernel -----------------------------------

def wsnet_allo_kernel(data_ref,
                      w1, b1, w2, b2, w3, b3, w4, b4,
                      wh, bh, aw2, ab2, aw3, ab3, aw4, ab4, aw5, ab5,
                      out_ref, *, n_agents, approx_recip):
    """data_ref: (TM, K*F) lane-packed input; out_ref: (K, TM) lane-dense softmax.

    Weights are pre-transposed to (in, out); w1/w2 are block-diagonal over the K
    agents; wh is the host-folded (features 64->1) x (allonet 5->16) head.
    The dtype of each bias sets that layer's epilogue/output precision.
    """
    tm = data_ref.shape[0]
    k = n_agents
    cdt = w1.dtype                  # matmul-operand dtype (bf16 perf path / f32 validation)
    dh = w2.shape[1] // k           # per-agent hidden width after layer 2 (= 64)

    def dense(h, w_ref, b_ref):
        y = jnp.dot(h, w_ref[...], preferred_element_type=b_ref.dtype)
        return _leaky(y + b_ref[...])

    x = data_ref[...]
    if x.dtype != cdt:              # host already casts; trace-time no-op normally
        x = x.astype(cdt)

    # ---- features layers 1-2: K agents packed along lanes (block-diag weights) ----
    h = dense(x, w1, b1)            # (TM, K*16)
    h = dense(h, w2, b2)            # (TM, K*64); agent a lives on lanes [a*64, a*64+64)

    # ---- relayout to row-stacked (K*TM, 64) for the wide shared layers ------------
    hs = jnp.concatenate([h[:, a * dh:(a + 1) * dh] for a in range(k)], axis=0)
    hs = dense(hs, w3, b3)          # (K*TM, 128)
    hs = dense(hs, w4, b4)          # (K*TM, 64)

    # ---- relayout back lane-packed (TM, K*64); folded head = ONE contraction-320 dot
    hl = jnp.concatenate([hs[a * tm:(a + 1) * tm, :] for a in range(k)], axis=1)
    a1 = dense(hl, wh, bh).astype(cdt)          # (TM, 16), f32 epilogue -> operand dtype

    # ---- rest of allonet -----------------------------------------------------------
    a2 = dense(a1, aw2, ab2)
    a3 = dense(a2, aw3, ab3)
    a4 = dense(a3, aw4, ab4)
    logits = (jnp.dot(a4, aw5[...], preferred_element_type=jnp.float32)
              + ab5[...])                        # (TM, K), f32

    # ---- softmax over the agent axis, computed & stored lane-dense ------------------
    lt = logits.T                                # (K, TM)
    mx = jnp.max(lt, axis=0, keepdims=True)
    e = jnp.exp(lt - mx)
    s = jnp.sum(e, axis=0, keepdims=True)
    if approx_recip:
        out_ref[...] = e * pl.reciprocal(s, approx=True)   # EUP slot, ~free
    else:
        out_ref[...] = e / s                                # exact (validation path)


# ----------------------------- host-side folding -----------------------------

def _fold_params(params, compute_dtype):
    (fw1, fb1, fw2, fb2, fw3, fb3, fw4, fb4, fw5, fb5,
     aw1, ab1, aw2, ab2, aw3, ab3, aw4, ab4, aw5, ab5) = params
    K, a_h = aw1.shape              # (5, 16)
    f_in, h1 = fw1.shape            # (8, 16)
    h2 = fw2.shape[1]               # 64

    # Block-diagonal weights: pack the K agents along the lane axis for the two
    # narrow feature layers (one wide matmul instead of K*TM skinny rows).
    w1_bd = jnp.zeros((K * f_in, K * h1), jnp.float32)
    w2_bd = jnp.zeros((K * h1, K * h2), jnp.float32)
    for k in range(K):
        w1_bd = w1_bd.at[k * f_in:(k + 1) * f_in, k * h1:(k + 1) * h1].set(fw1)
        w2_bd = w2_bd.at[k * h1:(k + 1) * h1, k * h2:(k + 1) * h2].set(fw2)
    b1_bd = jnp.tile(fb1, (1, K))
    b2_bd = jnp.tile(fb2, (1, K))

    # Fold (features 64->1, no activation in between) with (allonet 5->16):
    #   pre = sum_k h4_k @ (fw5[:,0:1] * aw1[k,:]) + fb5*sum_k aw1[k,:] + ab1
    w_head = (aw1[:, None, :] * fw5[:, 0][None, :, None]).reshape(K * h2, a_h)  # (320, 16)
    b_head = fb5[0, 0] * jnp.sum(aw1, axis=0, keepdims=True) + ab1              # (1, 16)

    cdt = compute_dtype
    f32 = jnp.float32
    # Hidden-layer biases in compute dtype => bf16 epilogues on the perf path.
    # The head (bh) and the logits (ab5) keep f32 epilogues for accuracy.
    return (w1_bd.astype(cdt), b1_bd.astype(cdt),
            w2_bd.astype(cdt), b2_bd.astype(cdt),
            fw3.astype(cdt), fb3.astype(cdt),
            fw4.astype(cdt), fb4.astype(cdt),
            w_head.astype(cdt), b_head.astype(f32),
            aw2.astype(cdt), ab2.astype(cdt),
            aw3.astype(cdt), ab3.astype(cdt),
            aw4.astype(cdt), ab4.astype(cdt),
            aw5.astype(cdt), ab5.astype(f32))


# --------------------------------- wrapper -----------------------------------

def wsnet_allo_forward(data, params, *, tm=1024, compute_dtype=jnp.bfloat16):
    """data: (B, J, K, F) with K=5, F=8; params: the 20 (in,out)-layout Linear params."""
    B, J, K, F = data.shape
    assert K == 5 and F == 8, "WSNet_allo fixes K=5 agents and F=8 input features"
    M = B * J

    folded = _fold_params(params, compute_dtype)
    # Free reshape (row-major contiguity of (B,J,K,F)); DMA'd at compute precision.
    x = data.reshape(M, K * F).astype(compute_dtype)

    # ---- row-tile selection (multiples of 16 keep bf16 sublane packing aligned) ----
    m_base = _round_up(M, 16)
    tm = max(128, min(_round_up(tm, 128), 2048))   # VMEM-safe cap for v5e / v7x
    if m_base <= 256:
        tm = m_base                                # tiny problem: a single block
    elif _round_up(m_base, tm) // tm < 2:
        # at least 2 grid steps so both v7x TensorCores get work
        tm = _round_up(pl.cdiv(m_base, 2), 128)
    m_pad = _round_up(M, tm)
    if m_pad != M:
        x = jnp.pad(x, ((0, m_pad - M), (0, 0)))   # zero rows; discarded after the call
    grid = (m_pad // tm,)

    def resident(arr):               # full-array VMEM-resident block, fetched once
        nd = arr.ndim
        return pl.BlockSpec(arr.shape, lambda i, _nd=nd: (0,) * _nd)

    in_specs = [pl.BlockSpec((tm, K * F), lambda i: (i, 0))]
    in_specs += [resident(arr) for arr in folded]
    out_spec = pl.BlockSpec((K, tm), lambda i: (0, i))

    # Advisory cost estimate for XLA scheduling around the custom call.
    macs_per_row = (K * (F * 16 + 16 * 64 + 64 * 128 + 128 * 64 + 64)
                    + (K * 16 + 16 * 64 + 64 * 128 + 128 * 64 + 64 * K))
    cost = pl.CostEstimate(
        flops=2 * M * macs_per_row,
        transcendentals=K * M,
        bytes_accessed=int(x.size * x.dtype.itemsize + K * M * 4
                           + sum(p.size * p.dtype.itemsize for p in folded)))

    kernel = functools.partial(wsnet_allo_kernel, n_agents=K,
                               approx_recip=(compute_dtype != jnp.float32))

    out_t = pl.pallas_call(
        kernel,
        out_shape=jax.ShapeDtypeStruct((K, m_pad), jnp.float32),
        grid_spec=pltpu.PrefetchScalarGridSpec(
            num_scalar_prefetch=0,
            grid=grid,
            in_specs=in_specs,
            out_specs=out_spec),
        compiler_params=pltpu.CompilerParams(
            dimension_semantics=("parallel",)),
        cost_estimate=cost,
    )(x, *folded)

    return out_t.T[:M].reshape(B, J, K)


# --------------- parameter construction (deterministic, PyTorch-like init) ---------------

def _init_linear(key, fan_in, fan_out):
    kw, kb = jax.random.split(key)
    bound = 1.0 / jnp.sqrt(jnp.float32(fan_in))
    # stored as (in, out), i.e. W^T relative to torch.nn.Linear.weight
    w = jax.random.uniform(kw, (fan_in, fan_out), jnp.float32, -bound, bound)
    b = jax.random.uniform(kb, (1, fan_out), jnp.float32, -bound, bound)
    return w, b


def make_params(key):
    feat_dims = [(8, 16), (16, 64), (64, 128), (128, 64), (64, 1)]
    allo_dims = [(5, 16), (16, 64), (64, 128), (128, 64), (64, 5)]
    keys = jax.random.split(key, len(feat_dims) + len(allo_dims))
    params = []
    for k, (fi, fo) in zip(keys[:5], feat_dims):
        params.extend(_init_linear(k, fi, fo))
    for k, (fi, fo) in zip(keys[5:], allo_dims):
        params.extend(_init_linear(k, fi, fo))
    return tuple(params)


# --------------------------- pure-JAX reference -----------------------------

def reference_forward(data, params):
    (fw1, fb1, fw2, fb2, fw3, fb3, fw4, fb4, fw5, fb5,
     aw1, ab1, aw2, ab2, aw3, ab3, aw4, ab4, aw5, ab5) = params
    B, J, K, F = data.shape
    x = data.reshape(B * J * K, F).astype(jnp.float32)
    h = _leaky(x @ fw1 + fb1)
    h = _leaky(h @ fw2 + fb2)
    h = _leaky(h @ fw3 + fb3)
    h = _leaky(h @ fw4 + fb4)
    feat = (h @ fw5 + fb5).reshape(B * J, K)
    a = _leaky(feat @ aw1 + ab1)
    a = _leaky(a @ aw2 + ab2)
    a = _leaky(a @ aw3 + ab3)
    a = _leaky(a @ aw4 + ab4)
    logits = a @ aw5 + ab5
    return jax.nn.softmax(logits, axis=-1).reshape(B, J, K)


if __name__ == "__main__":
    key = jax.random.PRNGKey(0)
    k_data, k_params, k_big = jax.random.split(key, 3)

    # Small shapes consistent with the module (K=5 agents, F=8 features are fixed).
    B, J, K, F = 2, 4, 5, 8
    data = jax.random.normal(k_data, (B, J, K, F), dtype=jnp.float32)
    params = make_params(k_params)

    ref = jax.block_until_ready(reference_forward(data, params))

    # 1) f32 validation path (f32 operands, exact reciprocal): tight check of the
    #    block-diagonal agent packing, both relayouts and the fw5 x aw1 head fold.
    fwd_f32 = jax.jit(functools.partial(wsnet_allo_forward, compute_dtype=jnp.float32))
    out_f32 = jax.block_until_ready(fwd_f32(data, params))
    assert out_f32.shape == (B, J, K)
    assert jnp.allclose(out_f32, ref, atol=1e-3, rtol=1e-3), \
        "f32 Pallas path mismatch vs reference"

    # 2) bf16 performance path (bf16 operands + bf16 hidden epilogues + approx recip).
    fwd_bf16 = jax.jit(functools.partial(wsnet_allo_forward, compute_dtype=jnp.bfloat16))
    out_bf16 = jax.block_until_ready(fwd_bf16(data, params))
    assert out_bf16.shape == (B, J, K)
    assert bool(jnp.all(jnp.isfinite(out_bf16)))
    assert jnp.allclose(jnp.sum(out_bf16, axis=-1), 1.0, atol=3e-3)
    assert jnp.allclose(out_bf16, ref, atol=4e-2), \
        "bf16 Pallas path diverged from reference"

    # 3) Multi-block path (row padding + >=2 grid steps) at a still-small shape.
    B2, J2 = 4, 80                               # M = 320 -> two 256-row tiles
    data2 = jax.random.normal(k_big, (B2, J2, K, F), dtype=jnp.float32)
    ref2 = reference_forward(data2, params)
    out2 = jax.block_until_ready(fwd_bf16(data2, params))
    assert out2.shape == (B2, J2, K)
    assert jnp.allclose(out2, ref2, atol=4e-2), \
        "multi-block bf16 path diverged from reference"

    print("KERNEL_OK")
</pallas_src>

<mosaic_0001>
module attributes {stable_mosaic.version = 11 : i64} {
  func.func @wsnet_allo_kernel(%arg0: i32, %arg1: memref<16x40xf32, #tpu.memory_space<vmem>>, %arg2: memref<40x80xf32, #tpu.memory_space<vmem>>, %arg3: memref<1x80xf32, #tpu.memory_space<vmem>>, %arg4: memref<80x320xf32, #tpu.memory_space<vmem>>, %arg5: memref<1x320xf32, #tpu.memory_space<vmem>>, %arg6: memref<64x128xf32, #tpu.memory_space<vmem>>, %arg7: memref<1x128xf32, #tpu.memory_space<vmem>>, %arg8: memref<128x64xf32, #tpu.memory_space<vmem>>, %arg9: memref<1x64xf32, #tpu.memory_space<vmem>>, %arg10: memref<320x16xf32, #tpu.memory_space<vmem>>, %arg11: memref<1x16xf32, #tpu.memory_space<vmem>>, %arg12: memref<16x64xf32, #tpu.memory_space<vmem>>, %arg13: memref<1x64xf32, #tpu.memory_space<vmem>>, %arg14: memref<64x128xf32, #tpu.memory_space<vmem>>, %arg15: memref<1x128xf32, #tpu.memory_space<vmem>>, %arg16: memref<128x64xf32, #tpu.memory_space<vmem>>, %arg17: memref<1x64xf32, #tpu.memory_space<vmem>>, %arg18: memref<64x5xf32, #tpu.memory_space<vmem>>, %arg19: memref<1x5xf32, #tpu.memory_space<vmem>>, %arg20: memref<5x16xf32, #tpu.memory_space<vmem>>) attributes {dimension_semantics = [#tpu.dimension_semantics<parallel>], iteration_bounds = array<i64: 1>, scalar_prefetch = 0 : i64, scratch_operands = 0 : i64, tpu.core_type = #tpu.core_type<tc>, window_params = [{transform_indices = @transform_0, window_bounds = array<i64: 16, 40>}, {pipeline_mode = #tpu.pipeline_mode<synchronous>, transform_indices = @transform_1, window_bounds = array<i64: 40, 80>}, {pipeline_mode = #tpu.pipeline_mode<synchronous>, transform_indices = @transform_2, window_bounds = array<i64: 1, 80>}, {pipeline_mode = #tpu.pipeline_mode<synchronous>, transform_indices = @transform_3, window_bounds = array<i64: 80, 320>}, {pipeline_mode = #tpu.pipeline_mode<synchronous>, transform_indices = @transform_4, window_bounds = array<i64: 1, 320>}, {pipeline_mode = #tpu.pipeline_mode<synchronous>, transform_indices = @transform_5, window_bounds = array<i64: 64, 128>}, {pipeline_mode = #tpu.pipeline_mode<synchronous>, transform_indices = @transform_6, window_bounds = array<i64: 1, 128>}, {pipeline_mode = #tpu.pipeline_mode<synchronous>, transform_indices = @transform_7, window_bounds = array<i64: 128, 64>}, {pipeline_mode = #tpu.pipeline_mode<synchronous>, transform_indices = @transform_8, window_bounds = array<i64: 1, 64>}, {pipeline_mode = #tpu.pipeline_mode<synchronous>, transform_indices = @transform_9, window_bounds = array<i64: 320, 16>}, {pipeline_mode = #tpu.pipeline_mode<synchronous>, transform_indices = @transform_10, window_bounds = array<i64: 1, 16>}, {pipeline_mode = #tpu.pipeline_mode<synchronous>, transform_indices = @transform_11, window_bounds = array<i64: 16, 64>}, {pipeline_mode = #tpu.pipeline_mode<synchronous>, transform_indices = @transform_12, window_bounds = array<i64: 1, 64>}, {pipeline_mode = #tpu.pipeline_mode<synchronous>, transform_indices = @transform_13, window_bounds = array<i64: 64, 128>}, {pipeline_mode = #tpu.pipeline_mode<synchronous>, transform_indices = @transform_14, window_bounds = array<i64: 1, 128>}, {pipeline_mode = #tpu.pipeline_mode<synchronous>, transform_indices = @transform_15, window_bounds = array<i64: 128, 64>}, {pipeline_mode = #tpu.pipeline_mode<synchronous>, transform_indices = @transform_16, window_bounds = array<i64: 1, 64>}, {pipeline_mode = #tpu.pipeline_mode<synchronous>, transform_indices = @transform_17, window_bounds = array<i64: 64, 5>}, {pipeline_mode = #tpu.pipeline_mode<synchronous>, transform_indices = @transform_18, window_bounds = array<i64: 1, 5>}, {transform_indices = @transform_19, window_bounds = array<i64: 5, 16>}]} {
    %c0 = arith.constant 0 : index
    %c0_0 = arith.constant 0 : index
    %0 = vector.load %arg1[%c0, %c0_0] : memref<16x40xf32, #tpu.memory_space<vmem>>, vector<16x40xf32>
    %c0_1 = arith.constant 0 : index
    %c0_2 = arith.constant 0 : index
    %1 = vector.load %arg2[%c0_1, %c0_2] : memref<40x80xf32, #tpu.memory_space<vmem>>, vector<40x80xf32>
    %cst = arith.constant dense<0.000000e+00> : vector<16x80xf32>
    %2 = tpu.matmul %0, %1, %cst {dimension_numbers = #tpu.dot_dimension_numbers<[1], [0], [0], [1], [0, 0, 1, 1], [], []>} : vector<16x40xf32>, vector<40x80xf32>, vector<16x80xf32> -> vector<16x80xf32>
    %c0_3 = arith.constant 0 : index
    %c0_4 = arith.constant 0 : index
    %3 = vector.load %arg3[%c0_3, %c0_4] : memref<1x80xf32, #tpu.memory_space<vmem>>, vector<1x80xf32>
    %4 = vector.broadcast %3 : vector<1x80xf32> to vector<16x80xf32>
    %5 = arith.addf %2, %4 : vector<16x80xf32>
    %cst_5 = arith.constant 0.00999999977 : f32
    %6 = vector.broadcast %cst_5 : f32 to vector<16x80xf32>
    %7 = arith.mulf %6, %5 : vector<16x80xf32>
    %8 = arith.maximumf %5, %7 : vector<16x80xf32>
    %c0_6 = arith.constant 0 : index
    %c0_7 = arith.constant 0 : index
    %9 = vector.load %arg4[%c0_6, %c0_7] : memref<80x320xf32, #tpu.memory_space<vmem>>, vector<80x320xf32>
    %cst_8 = arith.constant dense<0.000000e+00> : vector<16x320xf32>
    %10 = tpu.matmul %8, %9, %cst_8 {dimension_numbers = #tpu.dot_dimension_numbers<[1], [0], [0], [1], [0, 0, 1, 1], [], []>} : vector<16x80xf32>, vector<80x320xf32>, vector<16x320xf32> -> vector<16x320xf32>
    %c0_9 = arith.constant 0 : index
    %c0_10 = arith.constant 0 : index
    %11 = vector.load %arg5[%c0_9, %c0_10] : memref<1x320xf32, #tpu.memory_space<vmem>>, vector<1x320xf32>
    %12 = vector.broadcast %11 : vector<1x320xf32> to vector<16x320xf32>
    %13 = arith.addf %10, %12 : vector<16x320xf32>
    %cst_11 = arith.constant 0.00999999977 : f32
    %14 = vector.broadcast %cst_11 : f32 to vector<16x320xf32>
    %15 = arith.mulf %14, %13 : vector<16x320xf32>
    %16 = arith.maximumf %13, %15 : vector<16x320xf32>
    %17 = vector.extract_strided_slice %16 {offsets = [0, 0], sizes = [16, 64], strides = [1, 1]} : vector<16x320xf32> to vector<16x64xf32>
    %18 = vector.extract_strided_slice %16 {offsets = [0, 64], sizes = [16, 64], strides = [1, 1]} : vector<16x320xf32> to vector<16x64xf32>
    %19 = vector.extract_strided_slice %16 {offsets = [0, 128], sizes = [16, 64], strides = [1, 1]} : vector<16x320xf32> to vector<16x64xf32>
    %20 = vector.extract_strided_slice %16 {offsets = [0, 192], sizes = [16, 64], strides = [1, 1]} : vector<16x320xf32> to vector<16x64xf32>
    %21 = vector.extract_strided_slice %16 {offsets = [0, 256], sizes = [16, 64], strides = [1, 1]} : vector<16x320xf32> to vector<16x64xf32>
    %22 = tpu.concatenate %17, %18, %19, %20, %21 in 0 : vector<16x64xf32>, vector<16x64xf32>, vector<16x64xf32>, vector<16x64xf32>, vector<16x64xf32> -> vector<80x64xf32>
    %c0_12 = arith.constant 0 : index
    %c0_13 = arith.constant 0 : index
    %23 = vector.load %arg6[%c0_12, %c0_13] : memref<64x128xf32, #tpu.memory_space<vmem>>, vector<64x128xf32>
    %cst_14 = arith.constant dense<0.000000e+00> : vector<80x128xf32>
    %24 = tpu.matmul %22, %23, %cst_14 {dimension_numbers = #tpu.dot_dimension_numbers<[1], [0], [0], [1], [0, 0, 1, 1], [], []>} : vector<80x64xf32>, vector<64x128xf32>, vector<80x128xf32> -> vector<80x128xf32>
    %c0_15 = arith.constant 0 : index
    %c0_16 = arith.constant 0 : index
    %25 = vector.load %arg7[%c0_15, %c0_16] : memref<1x128xf32, #tpu.memory_space<vmem>>, vector<1x128xf32>
    %26 = vector.broadcast %25 : vector<1x128xf32> to vector<80x128xf32>
    %27 = arith.addf %24, %26 : vector<80x128xf32>
    %cst_17 = arith.constant 0.00999999977 : f32
    %28 = vector.broadcast %cst_17 : f32 to vector<80x128xf32>
    %29 = arith.mulf %28, %27 : vector<80x128xf32>
    %30 = arith.maximumf %27, %29 : vector<80x128xf32>
    %c0_18 = arith.constant 0 : index
    %c0_19 = arith.constant 0 : index
    %31 = vector.load %arg8[%c0_18, %c0_19] : memref<128x64xf32, #tpu.memory_space<vmem>>, vector<128x64xf32>
    %cst_20 = arith.constant dense<0.000000e+00> : vector<80x64xf32>
    %32 = tpu.matmul %30, %31, %cst_20 {dimension_numbers = #tpu.dot_dimension_numbers<[1], [0], [0], [1], [0, 0, 1, 1], [], []>} : vector<80x128xf32>, vector<128x64xf32>, vector<80x64xf32> -> vector<80x64xf32>
    %c0_21 = arith.constant 0 : index
    %c0_22 = arith.constant 0 : index
    %33 = vector.load %arg9[%c0_21, %c0_22] : memref<1x64xf32, #tpu.memory_space<vmem>>, vector<1x64xf32>
    %34 = vector.broadcast %33 : vector<1x64xf32> to vector<80x64xf32>
    %35 = arith.addf %32, %34 : vector<80x64xf32>
    %cst_23 = arith.constant 0.00999999977 : f32
    %36 = vector.broadcast %cst_23 : f32 to vector<80x64xf32>
    %37 = arith.mulf %36, %35 : vector<80x64xf32>
    %38 = arith.maximumf %35, %37 : vector<80x64xf32>
    %39 = vector.extract_strided_slice %38 {offsets = [0, 0], sizes = [16, 64], strides = [1, 1]} : vector<80x64xf32> to vector<16x64xf32>
    %40 = vector.extract_strided_slice %38 {offsets = [16, 0], sizes = [16, 64], strides = [1, 1]} : vector<80x64xf32> to vector<16x64xf32>
    %41 = vector.extract_strided_slice %38 {offsets = [32, 0], sizes = [16, 64], strides = [1, 1]} : vector<80x64xf32> to vector<16x64xf32>
    %42 = vector.extract_strided_slice %38 {offsets = [48, 0], sizes = [16, 64], strides = [1, 1]} : vector<80x64xf32> to vector<16x64xf32>
    %43 = vector.extract_strided_slice %38 {offsets = [64, 0], sizes = [16, 64], strides = [1, 1]} : vector<80x64xf32> to vector<16x64xf32>
    %44 = tpu.concatenate %39, %40, %41, %42, %43 in 1 : vector<16x64xf32>, vector<16x64xf32>, vector<16x64xf32>, vector<16x64xf32>, vector<16x64xf32> -> vector<16x320xf32>
    %c0_24 = arith.constant 0 : index
    %c0_25 = arith.constant 0 : index
    %45 = vector.load %arg10[%c0_24, %c0_25] : memref<320x16xf32, #tpu.memory_space<vmem>>, vector<320x16xf32>
    %cst_26 = arith.constant dense<0.000000e+00> : vector<16x16xf32>
    %46 = tpu.matmul %44, %45, %cst_26 {dimension_numbers = #tpu.dot_dimension_numbers<[1], [0], [0], [1], [0, 0, 1, 1], [], []>} : vector<16x320xf32>, vector<320x16xf32>, vector<16x16xf32> -> vector<16x16xf32>
    %c0_27 = arith.constant 0 : index
    %c0_28 = arith.constant 0 : index
    %47 = vector.load %arg11[%c0_27, %c0_28] : memref<1x16xf32, #tpu.memory_space<vmem>>, vector<1x16xf32>
    %48 = vector.broadcast %47 : vector<1x16xf32> to vector<16x16xf32>
    %49 = arith.addf %46, %48 : vector<16x16xf32>
    %cst_29 = arith.constant 0.00999999977 : f32
    %50 = vector.broadcast %cst_29 : f32 to vector<16x16xf32>
    %51 = arith.mulf %50, %49 : vector<16x16xf32>
    %52 = arith.maximumf %49, %51 : vector<16x16xf32>
    %c0_30 = arith.constant 0 : index
    %c0_31 = arith.constant 0 : index
    %53 = vector.load %arg12[%c0_30, %c0_31] : memref<16x64xf32, #tpu.memory_space<vmem>>, vector<16x64xf32>
    %cst_32 = arith.constant dense<0.000000e+00> : vector<16x64xf32>
    %54 = tpu.matmul %52, %53, %cst_32 {dimension_numbers = #tpu.dot_dimension_numbers<[1], [0], [0], [1], [0, 0, 1, 1], [], []>} : vector<16x16xf32>, vector<16x64xf32>, vector<16x64xf32> -> vector<16x64xf32>
    %c0_33 = arith.constant 0 : index
    %c0_34 = arith.constant 0 : index
    %55 = vector.load %arg13[%c0_33, %c0_34] : memref<1x64xf32, #tpu.memory_space<vmem>>, vector<1x64xf32>
    %56 = vector.broadcast %55 : vector<1x64xf32> to vector<16x64xf32>
    %57 = arith.addf %54, %56 : vector<16x64xf32>
    %cst_35 = arith.constant 0.00999999977 : f32
    %58 = vector.broadcast %cst_35 : f32 to vector<16x64xf32>
    %59 = arith.mulf %58, %57 : vector<16x64xf32>
    %60 = arith.maximumf %57, %59 : vector<16x64xf32>
    %c0_36 = arith.constant 0 : index
    %c0_37 = arith.constant 0 : index
    %61 = vector.load %arg14[%c0_36, %c0_37] : memref<64x128xf32, #tpu.memory_space<vmem>>, vector<64x128xf32>
    %cst_38 = arith.constant dense<0.000000e+00> : vector<16x128xf32>
    %62 = tpu.matmul %60, %61, %cst_38 {dimension_numbers = #tpu.dot_dimension_numbers<[1], [0], [0], [1], [0, 0, 1, 1], [], []>} : vector<16x64xf32>, vector<64x128xf32>, vector<16x128xf32> -> vector<16x128xf32>
    %c0_39 = arith.constant 0 : index
    %c0_40 = arith.constant 0 : index
    %63 = vector.load %arg15[%c0_39, %c0_40] : memref<1x128xf32, #tpu.memory_space<vmem>>, vector<1x128xf32>
    %64 = vector.broadcast %63 : vector<1x128xf32> to vector<16x128xf32>
    %65 = arith.addf %62, %64 : vector<16x128xf32>
    %cst_41 = arith.constant 0.00999999977 : f32
    %66 = vector.broadcast %cst_41 : f32 to vector<16x128xf32>
    %67 = arith.mulf %66, %65 : vector<16x128xf32>
    %68 = arith.maximumf %65, %67 : vector<16x128xf32>
    %c0_42 = arith.constant 0 : index
    %c0_43 = arith.constant 0 : index
    %69 = vector.load %arg16[%c0_42, %c0_43] : memref<128x64xf32, #tpu.memory_space<vmem>>, vector<128x64xf32>
    %cst_44 = arith.constant dense<0.000000e+00> : vector<16x64xf32>
    %70 = tpu.matmul %68, %69, %cst_44 {dimension_numbers = #tpu.dot_dimension_numbers<[1], [0], [0], [1], [0, 0, 1, 1], [], []>} : vector<16x128xf32>, vector<128x64xf32>, vector<16x64xf32> -> vector<16x64xf32>
    %c0_45 = arith.constant 0 : index
    %c0_46 = arith.constant 0 : index
    %71 = vector.load %arg17[%c0_45, %c0_46] : memref<1x64xf32, #tpu.memory_space<vmem>>, vector<1x64xf32>
    %72 = vector.broadcast %71 : vector<1x64xf32> to vector<16x64xf32>
    %73 = arith.addf %70, %72 : vector<16x64xf32>
    %cst_47 = arith.constant 0.00999999977 : f32
    %74 = vector.broadcast %cst_47 : f32 to vector<16x64xf32>
    %75 = arith.mulf %74, %73 : vector<16x64xf32>
    %76 = arith.maximumf %73, %75 : vector<16x64xf32>
    %c0_48 = arith.constant 0 : index
    %c0_49 = arith.constant 0 : index
    %77 = vector.load %arg18[%c0_48, %c0_49] : memref<64x5xf32, #tpu.memory_space<vmem>>, vector<64x5xf32>
    %cst_50 = arith.constant dense<0.000000e+00> : vector<16x5xf32>
    %78 = tpu.matmul %76, %77, %cst_50 {dimension_numbers = #tpu.dot_dimension_numbers<[1], [0], [0], [1], [0, 0, 1, 1], [], []>} : vector<16x64xf32>, vector<64x5xf32>, vector<16x5xf32> -> vector<16x5xf32>
    %c0_51 = arith.constant 0 : index
    %c0_52 = arith.constant 0 : index
    %79 = vector.load %arg19[%c0_51, %c0_52] : memref<1x5xf32, #tpu.memory_space<vmem>>, vector<1x5xf32>
    %80 = vector.broadcast %79 : vector<1x5xf32> to vector<16x5xf32>
    %81 = arith.addf %78, %80 : vector<16x5xf32>
    %82 = tpu.transpose %81, [1, 0] : vector<16x5xf32> -> vector<5x16xf32>
    %cst_53 = arith.constant dense<0xFF800000> : vector<16xf32>
    %83 = vector.multi_reduction <maximumf>, %82, %cst_53 [0] : vector<5x16xf32> to vector<16xf32>
    %84 = vector.shape_cast %83 : vector<16xf32> to vector<1x16xf32>
    %85 = vector.broadcast %84 : vector<1x16xf32> to vector<5x16xf32>
    %86 = arith.subf %82, %85 : vector<5x16xf32>
    %87 = math.exp %86 : vector<5x16xf32>
    %cst_54 = arith.constant dense<0.000000e+00> : vector<16xf32>
    %88 = vector.multi_reduction <add>, %87, %cst_54 [0] : vector<5x16xf32> to vector<16xf32>
    %89 = vector.shape_cast %88 : vector<16xf32> to vector<1x16xf32>
    %90 = vector.broadcast %89 : vector<1x16xf32> to vector<5x16xf32>
    %91 = arith.divf %87, %90 : vector<5x16xf32>
    %c0_55 = arith.constant 0 : index
    %c0_56 = arith.constant 0 : index
    %92 = vector.load %arg20[%c0_55, %c0_56] : memref<5x16xf32, #tpu.memory_space<vmem>>, vector<5x16xf32>
    tpu.vector_store %arg20[%c0_55, %c0_56], %91 {strides = array<i32>} : memref<5x16xf32, #tpu.memory_space<vmem>>, vector<5x16xf32>,
    return
  }
  func.func @transform_0(%arg0: i32) -> (i32, i32) {
    %c0_i32 = arith.constant 0 : i32
    %c0_i32_0 = arith.constant 0 : i32
    return %arg0, %c0_i32 : i32, i32
  }
  func.func @transform_1(%arg0: i32) -> (i32, i32) {
    %c0_i32 = arith.constant 0 : i32
    %c0_i32_0 = arith.constant 0 : i32
    %c0_i32_1 = arith.constant 0 : i32
    return %c0_i32, %c0_i32_0 : i32, i32
  }
  func.func @transform_2(%arg0: i32) -> (i32, i32) {
    %c0_i32 = arith.constant 0 : i32
    %c0_i32_0 = arith.constant 0 : i32
    %c0_i32_1 = arith.constant 0 : i32
    return %c0_i32, %c0_i32_0 : i32, i32
  }
  func.func @transform_3(%arg0: i32) -> (i32, i32) {
    %c0_i32 = arith.constant 0 : i32
    %c0_i32_0 = arith.constant 0 : i32
    %c0_i32_1 = arith.constant 0 : i32
    return %c0_i32, %c0_i32_0 : i32, i32
  }
  func.func @transform_4(%arg0: i32) -> (i32, i32) {
    %c0_i32 = arith.constant 0 : i32
    %c0_i32_0 = arith.constant 0 : i32
    %c0_i32_1 = arith.constant 0 : i32
    return %c0_i32, %c0_i32_0 : i32, i32
  }
  func.func @transform_5(%arg0: i32) -> (i32, i32) {
    %c0_i32 = arith.constant 0 : i32
    %c0_i32_0 = arith.constant 0 : i32
    %c0_i32_1 = arith.constant 0 : i32
    return %c0_i32, %c0_i32_0 : i32, i32
  }
  func.func @transform_6(%arg0: i32) -> (i32, i32) {
    %c0_i32 = arith.constant 0 : i32
    %c0_i32_0 = arith.constant 0 : i32
    %c0_i32_1 = arith.constant 0 : i32
    return %c0_i32, %c0_i32_0 : i32, i32
  }
  func.func @transform_7(%arg0: i32) -> (i32, i32) {
    %c0_i32 = arith.constant 0 : i32
    %c0_i32_0 = arith.constant 0 : i32
    %c0_i32_1 = arith.constant 0 : i32
    return %c0_i32, %c0_i32_0 : i32, i32
  }
  func.func @transform_8(%arg0: i32) -> (i32, i32) {
    %c0_i32 = arith.constant 0 : i32
    %c0_i32_0 = arith.constant 0 : i32
    %c0_i32_1 = arith.constant 0 : i32
    return %c0_i32, %c0_i32_0 : i32, i32
  }
  func.func @transform_9(%arg0: i32) -> (i32, i32) {
    %c0_i32 = arith.constant 0 : i32
    %c0_i32_0 = arith.constant 0 : i32
    %c0_i32_1 = arith.constant 0 : i32
    return %c0_i32, %c0_i32_0 : i32, i32
  }
  func.func @transform_10(%arg0: i32) -> (i32, i32) {
    %c0_i32 = arith.constant 0 : i32
    %c0_i32_0 = arith.constant 0 : i32
    %c0_i32_1 = arith.constant 0 : i32
    return %c0_i32, %c0_i32_0 : i32, i32
  }
  func.func @transform_11(%arg0: i32) -> (i32, i32) {
    %c0_i32 = arith.constant 0 : i32
    %c0_i32_0 = arith.constant 0 : i32
    %c0_i32_1 = arith.constant 0 : i32
    return %c0_i32, %c0_i32_0 : i32, i32
  }
  func.func @transform_12(%arg0: i32) -> (i32, i32) {
    %c0_i32 = arith.constant 0 : i32
    %c0_i32_0 = arith.constant 0 : i32
    %c0_i32_1 = arith.constant 0 : i32
    return %c0_i32, %c0_i32_0 : i32, i32
  }
  func.func @transform_13(%arg0: i32) -> (i32, i32) {
    %c0_i32 = arith.constant 0 : i32
    %c0_i32_0 = arith.constant 0 : i32
    %c0_i32_1 = arith.constant 0 : i32
    return %c0_i32, %c0_i32_0 : i32, i32
  }
  func.func @transform_14(%arg0: i32) -> (i32, i32) {
    %c0_i32 = arith.constant 0 : i32
    %c0_i32_0 = arith.constant 0 : i32
    %c0_i32_1 = arith.constant 0 : i32
    return %c0_i32, %c0_i32_0 : i32, i32
  }
  func.func @transform_15(%arg0: i32) -> (i32, i32) {
    %c0_i32 = arith.constant 0 : i32
    %c0_i32_0 = arith.constant 0 : i32
    %c0_i32_1 = arith.constant 0 : i32
    return %c0_i32, %c0_i32_0 : i32, i32
  }
  func.func @transform_16(%arg0: i32) -> (i32, i32) {
    %c0_i32 = arith.constant 0 : i32
    %c0_i32_0 = arith.constant 0 : i32
    %c0_i32_1 = arith.constant 0 : i32
    return %c0_i32, %c0_i32_0 : i32, i32
  }
  func.func @transform_17(%arg0: i32) -> (i32, i32) {
    %c0_i32 = arith.constant 0 : i32
    %c0_i32_0 = arith.constant 0 : i32
    %c0_i32_1 = arith.constant 0 : i32
    return %c0_i32, %c0_i32_0 : i32, i32
  }
  func.func @transform_18(%arg0: i32) -> (i32, i32) {
    %c0_i32 = arith.constant 0 : i32
    %c0_i32_0 = arith.constant 0 : i32
    %c0_i32_1 = arith.constant 0 : i32
    return %c0_i32, %c0_i32_0 : i32, i32
  }
  func.func @transform_19(%arg0: i32) -> (i32, i32) {
    %c0_i32 = arith.constant 0 : i32
    %c0_i32_0 = arith.constant 0 : i32
    return %c0_i32, %arg0 : i32, i32
  }
}

</mosaic_0001>

<bundles_post_ra>
// kernel: wsnet_allo_forward.1
= control target key start
LH: loop header
LB: loop body
LE: loop exit
PB: predicated region body
PF: predicated region fallthrough
CT: control target
= control target key end

     0   :  { %vm76_vm0 = vcmask 326656   ;;  %v2026_v54 = vmov 0.0   ;;  %vm209_vm1 = vcmask 654336   ;;  %vm407_vm2 = vcmask 523264   ;;  %s2616_s1 = inlined_call_operand.vmem [shape: f32[40,80], index: 1, kind: input, shape index: {}]   ;;  %s2617_s0 = inlined_call_operand.vmem [shape: f32[16,40], index: 0, kind: input, shape index: {}]   ;;  %s2618_s3 = inlined_call_operand.vmem [shape: f32[80,320], index: 3, kind: input, shape index: {}]   ;;  %s2619_s5 = inlined_call_operand.vmem [shape: f32[64,128], index: 5, kind: input, shape index: {}]   ;;  %s2620_s2 = inlined_call_operand.vmem [shape: f32[1,80], index: 2, kind: input, shape index: {}]   ;;  %s2621_s4 = inlined_call_operand.vmem [shape: f32[1,320], index: 4, kind: input, shape index: {}]   ;;  %s2622_s7 = inlined_call_operand.vmem [shape: f32[128,64], index: 7, kind: input, shape index: {}]   ;;  %s2623_s6 = inlined_call_operand.vmem [shape: f32[1,128], index: 6, kind: input, shape index: {}]   ;;  %s2624_s9 = inlined_call_operand.vmem [shape: f32[320,16], index: 9, kind: input, shape index: {}]   ;;  %s2625_s8 = inlined_call_operand.vmem [shape: f32[1,64], index: 8, kind: input, shape index: {}]   ;;  %s2626_s11 = inlined_call_operand.vmem [shape: f32[16,64], index: 11, kind: input, shape index: {}]   ;;  %s2627_s13 = inlined_call_operand.vmem [shape: f32[64,128], index: 13, kind: input, shape index: {}]   ;;  %s2628_s10 = inlined_call_operand.vmem [shape: f32[1,16], index: 10, kind: input, shape index: {}]   ;;  %s2629_s15 = inlined_call_operand.vmem [shape: f32[128,64], index: 15, kind: input, shape index: {}]   ;;  %s2630_s12 = inlined_call_operand.vmem [shape: f32[1,64], index: 12, kind: input, shape index: {}]   ;;  %s2631_s17 = inlined_call_operand.vmem [shape: f32[64,5], index: 17, kind: input, shape index: {}]   ;;  %s2632_s14 = inlined_call_operand.vmem [shape: f32[1,128], index: 14, kind: input, shape index: {}]   ;;  %s2633_s16 = inlined_call_operand.vmem [shape: f32[1,64], index: 16, kind: input, shape index: {}]   ;;  %s2634_s18 = inlined_call_operand.vmem [shape: f32[1,5], index: 18, kind: input, shape index: {}]   ;;  %s2635_s19 = inlined_call_operand.vmem [shape: f32[5,16], index: 19, kind: output, shape index: {}]  }
   0x1   :  { %2640 = sst [smem:[#allocation2_spill]] %s2616_s1  ;;  %280 = vmatprep.mubr.f32.mxu1 %v2026_v54  ;;  %v1400_v58 = vld [vmem:[%s2620_s2] ss:$0 sm:$0xff]  ;;  %vm959_vm3 = vcmask 130048   ;;  %vm1375_vm4 = vcmask 126976  }
   0x2   :  { %2641 = sst [smem:[#allocation3_spill]] %s2617_s0  ;;  %s2644_s20 = sld [smem:[#allocation2_spill]] }
   0x3   :  { %2642 = sst [smem:[#allocation4_spill]] %s2618_s3  ;;  %s2645_s26 = sld [smem:[#allocation3_spill]] }
   0x4   :  { %2643 = sst [smem:[#allocation5_spill]] %s2619_s5  ;;  %s2646_s29 = sld [smem:[#allocation4_spill]] }
   0x5   :  { %s2647_s27 = sld [smem:[#allocation5_spill]] }
   0x8   :  { %v64_v0 = vld [vmem:[%s2644_s20] sm:$0xff]  ;;  %v65_v1 = vld [vmem:[%s2644_s20 + $0x8] sm:$0xff]  ;;  %v66_v2 = vld [vmem:[%s2644_s20 + $0x10] sm:$0xff] }
   0x9   :  { %v1798_v3 = vpack.c.bf16 %v65_v1, %v64_v0  ;;  %v67_v4 = vld [vmem:[%s2644_s20 + $0x18] sm:$0xff]  ;;  %v62_v5 = vld [vmem:[%s2645_s26] sm:$0xff]  ;;  %v63_v30 = vld [vmem:[%s2645_s26 + $0x8] sm:$0xff] }
   0xa   :  { %v1802_v6 = vpack.c.bf16 %v67_v4, %v66_v2  ;;  %1595 = vmatprep.mubr.msk.f32.mxu0 %vm76_vm0, %v62_v5  ;;  %v163_v7 = vld [vmem:[%s2646_s29 + $0x8] sm:$0xff]  ;;  %v166_v8 = vld [vmem:[%s2646_s29 + $0x20] sm:$0xff]  ;;  %v165_v11 = vld [vmem:[%s2646_s29 + $0x18] sm:$0xff] }
   0xb   :  { %1799 = vmatprep.subr.bf16.mxu0 %v1798_v3  ;;  %v1806_v9 = vpack.c.bf16 %v166_v8, %v163_v7  ;;  %v162_v10 = vld [vmem:[%s2646_s29] sm:$0xff]  ;;  %v169_v14 = vld [vmem:[%s2646_s29 + $0x38] sm:$0xff]  ;;  %v172_v15 = vld [vmem:[%s2646_s29 + $0x50] sm:$0xff] }
   0xc   :  { %1801 = vmatpush3.bf16.msra.mxu0 %v1798_v3  ;;  %v68_v12 = vld [vmem:[%s2644_s20 + $0x20] sm:$0xff]  ;;  %v1808_v13 = vpack.c.bf16 %v165_v11, %v162_v10  ;;  %v164_v16 = vld [vmem:[%s2646_s29 + $0x10] sm:$0xff]  ;;  %v1810_v17 = vpack.c.bf16 %v172_v15, %v169_v14  ;;  %v171_v19 = vld [vmem:[%s2646_s29 + $0x48] sm:$0xff] }
   0xd   :  { %1803 = vmatprep.subr.bf16.mxu0 %v1802_v6  ;;  %1807 = vmatprep.subr.bf16.mxu1 %v1806_v9  ;;  %v168_v18 = vld [vmem:[%s2646_s29 + $0x30] sm:$0xff]  ;;  %v167_v20 = vld [vmem:[%s2646_s29 + $0x28] sm:$0xff]  ;;  %v178_v23 = vld [vmem:[%s2646_s29 + $0x80] sm:$0xff] }
   0xe   :  { %1809 = vmatpush1.bf16.msra.mxu1 %v1808_v13  ;;  %v1812_v21 = vpack.c.bf16 %v171_v19, %v168_v18  ;;  %v175_v22 = vld [vmem:[%s2646_s29 + $0x68] sm:$0xff]  ;;  %v174_v25 = vld [vmem:[%s2646_s29 + $0x60] sm:$0xff]  ;;  %v177_v26 = vld [vmem:[%s2646_s29 + $0x78] sm:$0xff]  ;;  %v1826_v29 = vpack.c.bf16 %v167_v20, %v164_v16 }
   0xf   :  { %1811 = vmatprep.subr.bf16.mxu1 %v1810_v17  ;;  %v1814_v24 = vpack.c.bf16 %v178_v23, %v175_v22  ;;  %v170_v27 = vld [vmem:[%s2646_s29 + $0x40] sm:$0xff]  ;;  %v173_v28 = vld [vmem:[%s2646_s29 + $0x58] sm:$0xff]  ;;  %v1816_v31 = vpack.c.bf16 %v177_v26, %v174_v25  ;;  %v176_v33 = vld [vmem:[%s2646_s29 + $0x70] sm:$0xff] }
  0x10   :  { %1805 = vmatpush3.bf16.msra.mxu0 %v1802_v6  ;;  %v1830_v32 = vpack.c.bf16 %v173_v28, %v170_v27  ;;  %v179_v34 = vld [vmem:[%s2646_s29 + $0x88] sm:$0xff]  ;;  %v181_v36 = vld [vmem:[%s2646_s29 + $0x98] sm:$0xff]  ;;  %v184_v37 = vld [vmem:[%s2646_s29 + $0xb0] sm:$0xff] }
  0x11   :  { %1593 = vmatprep.subr.mxu0 %v68_v12  ;;  %v1834_v35 = vpack.c.bf16 %v179_v34, %v176_v33  ;;  %v1818_v38 = vpack.c.bf16 %v184_v37, %v181_v36  ;;  %v180_v39 = vld [vmem:[%s2646_s29 + $0x90] sm:$0xff]  ;;  %v183_v40 = vld [vmem:[%s2646_s29 + $0xa8] sm:$0xff]  ;;  %v182_v41 = vld [vmem:[%s2646_s29 + $0xa0] sm:$0xff] }
  0x12   :  { %1813 = vmatpush1.bf16.msra.mxu1 %v1812_v21  ;;  %v1820_v42 = vpack.c.bf16 %v183_v40, %v180_v39  ;;  %v185_v43 = vld [vmem:[%s2646_s29 + $0xb8] sm:$0xff]  ;;  %v187_v45 = vld [vmem:[%s2646_s29 + $0xc8] sm:$0xff]  ;;  %v190_v46 = vld [vmem:[%s2646_s29 + $0xe0] sm:$0xff] }
  0x13   :  { %1815 = vmatprep.subr.bf16.mxu1 %v1814_v24  ;;  %v1838_v44 = vpack.c.bf16 %v185_v43, %v182_v41  ;;  %v1822_v47 = vpack.c.bf16 %v190_v46, %v187_v45  ;;  %v186_v48 = vld [vmem:[%s2646_s29 + $0xc0] sm:$0xff]  ;;  %v189_v49 = vld [vmem:[%s2646_s29 + $0xd8] sm:$0xff]  ;;  %v188_v50 = vld [vmem:[%s2646_s29 + $0xd0] sm:$0xff] }
  0x14   :  { %1594 = vmatpush3.msra.mxu0 %v68_v12  ;;  %v1824_v51 = vpack.c.bf16 %v189_v49, %v186_v48  ;;  %v191_v52 = vld [vmem:[%s2646_s29 + $0xe8] sm:$0xff]  ;;  %v392_v55 = vld [vmem:[%s2647_s27] sm:$0xff]  ;;  %v394_v1 = vld [vmem:[%s2647_s27 + $0x10] sm:$0xff]  ;;  %v194_v12 = vlaneseq }
  0x15   :  { %1596 = vmatmul.mubr.msk.f32.vlgmr.msra.gmra.mrb[0].mxu0 %vm76_vm0, %v63_v30  ;;  %1827 = vmatprep.subr.bf16.mxu0 %v1826_v29  ;;  %v1842_v53 = vpack.c.bf16 %v191_v52, %v188_v50  ;;  %v393_v56 = vld [vmem:[%s2647_s27 + $0x8] sm:$0xff]  ;;  %v395_v2 = vld [vmem:[%s2647_s27 + $0x18] sm:$0xff]  ;;  %v396_v6 = vld [vmem:[%s2647_s27 + $0x20] sm:$0xff] }
  0x16   :  { %1829 = vmatpush3.bf16.msra.mxu0 %v1826_v29  ;;  %1817 = vmatpush1.bf16.msra.mxu1 %v1816_v31  ;;  %v1846_v57 = vpack.c.bf16 %v393_v56, %v392_v55  ;;  %v1850_v5 = vpack.c.bf16 %v395_v2, %v394_v1  ;;  %v397_v7 = vld [vmem:[%s2647_s27 + $0x28] sm:$0xff]  ;;  %v398_v9 = vld [vmem:[%s2647_s27 + $0x30] sm:$0xff]  ;;  %v399_v10 = vld [vmem:[%s2647_s27 + $0x38] sm:$0xff]  ;;  %v2268_v13 = vshrl.u32 %v194_v12, 7 }
  0x17   :  { %1831 = vmatprep.subr.bf16.mxu0 %v1830_v32  ;;  %1819 = vmatprep.subr.bf16.mxu1 %v1818_v38  ;;  %v1854_v8 = vpack.c.bf16 %v397_v7, %v396_v6  ;;  %v1858_v11 = vpack.c.bf16 %v399_v10, %v398_v9  ;;  %v2274_v15 = vld [vmem:[%s2621_s4] sm:$0x7]  ;;  %s2027_s4 = smov 64   ;;  %v566_v38 = vld [vmem:[%s2622_s7 + $0x8] sm:$0xff]  ;;  %v567_v39 = vld [vmem:[%s2622_s7 + $0x10] sm:$0xff] }
  0x18   :  { %v196_v14 = vsub.s32 0, %v2268_v13  ;;  %v200_v16 = vsub.s32 1, %v2268_v13  ;;  %v565_v37 = vld [vmem:[%s2622_s7] sm:$0xff]  ;;  %v568_v41 = vld [vmem:[%s2622_s7 + $0x18] sm:$0xff]  ;;  %v571_v46 = vld [vmem:[%s2622_s7 + $0x30] sm:$0xff] }
  0x19   :  { %v1862_v40 = vpack.c.bf16 %v566_v38, %v565_v37  ;;  %v569_v43 = vld [vmem:[%s2622_s7 + $0x20] sm:$0xff]  ;;  %v574_v50 = vld [vmem:[%s2622_s7 + $0x48] sm:$0xff]  ;;  %v575_v52 = vld [vmem:[%s2622_s7 + $0x50] sm:$0xff] }
  0x1a   :  { %1833 = vmatpush3.bf16.msra.mxu0 %v1830_v32  ;;  %1821 = vmatpush1.bf16.msra.mxu1 %v1820_v42  ;;  %v197_v17 = vrot.slane %v2274_v15, %v196_v14  ;;  %v201_v18 = vrot.slane %v2274_v15, %v200_v16  ;;  %v1866_v42 = vpack.c.bf16 %v568_v41, %v567_v39  ;;  %v573_v49 = vld [vmem:[%s2622_s7 + $0x40] sm:$0xff]  ;;  %v578_v56 = vld [vmem:[%s2622_s7 + $0x68] sm:$0xff] }
  0x1b   :  { %1835 = vmatprep.subr.bf16.mxu0 %v1834_v35  ;;  %1823 = vmatprep.subr.bf16.mxu1 %v1822_v47  ;;  %v572_v47 = vld [vmem:[%s2622_s7 + $0x38] sm:$0xff]  ;;  %v577_v55 = vld [vmem:[%s2622_s7 + $0x60] sm:$0xff] }
  0x1c   :  { %v1874_v48 = vpack.c.bf16 %v572_v47, %v571_v46  ;;  %v1407_v9 = vld [vmem:[%s2623_s6] ss:$0 sm:$0xff] }
  0x1e   :  { %1837 = vmatpush3.bf16.msra.mxu0 %v1834_v35  ;;  %1825 = vmatpush1.bf16.msra.mxu1 %v1824_v51  ;;  %v1878_v51 = vpack.c.bf16 %v574_v50, %v573_v49  ;;  %v775_v50 = vld [vmem:[%s2624_s9 + $0x100] sm:$0xff] }
  0x1f   :  { %1839 = vmatprep.subr.bf16.mxu0 %v1838_v44  ;;  %1847 = vmatprep.subr.bf16.mxu1 %v1846_v57 }
  0x22   :  { %1841 = vmatpush3.bf16.msra.mxu0 %v1838_v44  ;;  %v570_v44 = vld [vmem:[%s2622_s7 + $0x28] sm:$0xff] }
  0x23   :  { %1843 = vmatprep.subr.bf16.mxu0 %v1842_v53  ;;  %v1870_v45 = vpack.c.bf16 %v570_v44, %v569_v43 }
  0x26   :  { %1845 = vmatpush3.bf16.msra.mxu0 %v1842_v53  ;;  %v576_v53 = vld [vmem:[%s2622_s7 + $0x58] sm:$0xff] }
  0x27   :  { %1863 = vmatprep.subr.bf16.mxu0 %v1862_v40 }
  0xe8   :  { %v1597_v59 = vpop.f32.mrb[0].mxu0 }
  0xe9   :  { %v155_v60 = vadd.f32 %v1597_v59, %v1400_v58  ;;  %v149_v61 = vpop.f32.mrb[1].mxu0  ;;  %v580_v59 = vld [vmem:[%s2622_s7 + $0x78] sm:$0xff] }
  0xea   :  { %v150_v62 = vadd.f32 %v1400_v58, %v149_v61  ;;  %v579_v58 = vld [vmem:[%s2622_s7 + $0x70] sm:$0xff]  ;;  %v204_v61 = vsub.s32 2, %v2268_v13 }
  0xeb   :  { %v159_v63 = vmul.f32 0.01, %v155_v60 }
  0xec   :  { %v158_v0 = vmul.f32 0.01, %v150_v62 }
  0xed   :  { %v161_v4 = vmax.f32 %v155_v60, %v159_v63  ;;  %v1890_v60 = vpack.c.bf16 %v580_v59, %v579_v58 }
  0xee   :  { %v160_v3 = vmax.f32 %v150_v62, %v158_v0  ;;  %v205_v62 = vrot.slane %v2274_v15, %v204_v61  ;;  %v781_v61 = vld [vmem:[%s2624_s9 + $0x130] sm:$0xff] }
  0xf0   :  { %1403 = vmatmul.mubr.msk.f32.vlgmr.msra.gmra.mrb[0].mxu1 %vm209_vm1, %v160_v3  ;;  %1618 = vmatprep.mubr.msk.f32.mxu0 %vm209_vm1, %v160_v3 }
  0xf1   :  { %1619 = vmatmul.mubr.msk.f32.vlgmr.msra.gmra.mrb[2].mxu0 %vm209_vm1, %v161_v4  ;;  %286 = vmatprep.mubr.f32.mxu1 %v2026_v54  ;;  %v1882_v54 = vpack.c.bf16 %v576_v53, %v575_v52  ;;  %v777_v53 = vld [vmem:[%s2624_s9 + $0x110] sm:$0xff] }
  0xf2   :  { %1849 = vmatpush3.bf16.msra.mxu1 %v1846_v57  ;;  %1865 = vmatpush3.bf16.msra.mxu0 %v1862_v40  ;;  %v1886_v57 = vpack.c.bf16 %v578_v56, %v577_v55  ;;  %v779_v56 = vld [vmem:[%s2624_s9 + $0x120] sm:$0xff] }
  0xf3   :  { %1851 = vmatprep.subr.bf16.mxu1 %v1850_v5  ;;  %1867 = vmatprep.subr.bf16.mxu0 %v1866_v42 }
  0xf4   :  { %1404 = vmatmul.mubr.msk.f32.gmra.mrb[2].mxu1 %vm209_vm1, %v161_v4 }
  0xf6   :  { %1853 = vmatpush3.bf16.msra.mxu1 %v1850_v5  ;;  %1869 = vmatpush3.bf16.msra.mxu0 %v1866_v42 }
  0xf7   :  { %1855 = vmatprep.subr.bf16.mxu1 %v1854_v8  ;;  %1871 = vmatprep.subr.bf16.mxu0 %v1870_v45 }
  0xfa   :  { %1857 = vmatpush3.bf16.msra.mxu1 %v1854_v8  ;;  %1873 = vmatpush3.bf16.msra.mxu0 %v1870_v45 }
  0xfb   :  { %1859 = vmatprep.subr.bf16.mxu1 %v1858_v11  ;;  %1875 = vmatprep.subr.bf16.mxu0 %v1874_v48 }
  0xfe   :  { %1861 = vmatpush3.bf16.msra.mxu1 %v1858_v11  ;;  %1877 = vmatpush3.bf16.msra.mxu0 %v1874_v48 }
  0xff   :  { %1879 = vmatprep.subr.bf16.mxu0 %v1878_v51 }
 0x102   :  { %1881 = vmatpush3.bf16.msra.mxu0 %v1878_v51  ;;  %v776_v51 = vld [vmem:[%s2624_s9 + $0x108] sm:$0xff] }
 0x103   :  { %1883 = vmatprep.subr.bf16.mxu0 %v1882_v54  ;;  %v1926_v52 = vpack.c.bf16 %v776_v51, %v775_v50 }
 0x106   :  { %1885 = vmatpush3.bf16.msra.mxu0 %v1882_v54  ;;  %v778_v54 = vld [vmem:[%s2624_s9 + $0x118] sm:$0xff] }
 0x107   :  { %1887 = vmatprep.subr.bf16.mxu0 %v1886_v57  ;;  %v1930_v55 = vpack.c.bf16 %v778_v54, %v777_v53 }
 0x10a   :  { %1889 = vmatpush3.bf16.msra.mxu0 %v1886_v57  ;;  %v780_v57 = vld [vmem:[%s2624_s9 + $0x128] sm:$0xff] }
 0x10b   :  { %1891 = vmatprep.subr.bf16.mxu0 %v1890_v60  ;;  %v1934_v58 = vpack.c.bf16 %v780_v57, %v779_v56 }
 0x10e   :  { %1893 = vmatpush3.bf16.msra.mxu0 %v1890_v60 }
 0x10f   :  { %1927 = vmatprep.subr.bf16.mxu0 %v1926_v52 }
 0x1c3   :  { %v282_v19 = vpop.f32.mrb[0].mxu1 }
 0x1c4   :  { %v283_v20 = vadd.f32 %v282_v19, %v197_v17  ;;  %v284_v21 = vpop.f32.mrb[1].mxu1  ;;  %v2279_v22 = vpop.f32.mrb[2].mxu0 }
 0x1c5   :  { %v285_v23 = vadd.f32 %v284_v21, %v201_v18  ;;  %v2281_v24 = vpop.f32.mrb[3].mxu0  ;;  %v365_v3 = vadd.f32 %v2279_v22, %v205_v62 }
 0x1c6   :  { %v368_v25 = vmul.f32 0.01, %v283_v20  ;;  %v360_v0 = vadd.f32 %v2281_v24, %v205_v62  ;;  %v782_v62 = vld [vmem:[%s2624_s9 + $0x138] sm:$0xff] }
 0x1c7   :  { %v369_v26 = vmul.f32 0.01, %v285_v23  ;;  %v288_v27 = vpop.f32.mrb[2].mxu1  ;;  %v373_v5 = vmul.f32 0.01, %v365_v3 }
 0x1c8   :  { %v289_v28 = vadd.f32 %v288_v27, %v197_v17  ;;  %v290_v29 = vpop.f32.mrb[3].mxu1  ;;  %v374_v30 = vmax.f32 %v283_v20, %v368_v25  ;;  %v370_v4 = vmul.f32 0.01, %v360_v0 }
 0x1c9   :  { %v291_v31 = vadd.f32 %v290_v29, %v201_v18  ;;  %v375_v32 = vmax.f32 %v285_v23, %v369_v26  ;;  %v379_v8 = vmax.f32 %v365_v3, %v373_v5  ;;  %v761_v5 = vld [vmem:[%s2624_s9 + $0x90] sm:$0xff] }
 0x1ca   :  { %v371_v33 = vmul.f32 0.01, %v289_v28  ;;  %382 = vrot.lane.b32.xlu0 %v374_v30, %s2027_s4  ;;  %1637 = vmatprep.mubr.msk.f32.mxu1 %vm407_vm2, %v374_v30  ;;  %v376_v6 = vmax.f32 %v360_v0, %v370_v4  ;;  %v759_v0 = vld [vmem:[%s2624_s9 + $0x80] sm:$0xff]  ;;  %v744_v4 = vld [vmem:[%s2624_s9 + $0x8] sm:$0xff] }
 0x1cb   :  { %v372_v34 = vmul.f32 0.01, %v291_v31  ;;  %388 = vrot.lane.b32.xlu1 %v375_v32, %s2027_s4 }
 0x1cc   :  { %v377_v35 = vmax.f32 %v289_v28, %v371_v33 }
 0x1cd   :  { %v378_v36 = vmax.f32 %v291_v31, %v372_v34 }
 0x1ce   :  { %384 = vrot.lane.b32.xlu0 %v377_v35, %s2027_s4  ;;  %1638 = vmatmul.mubr.msk.f32.vlgmr.msra.gmra.mrb[4].mxu1 %vm407_vm2, %v377_v35 }
 0x1cf   :  { %390 = vrot.lane.b32.xlu1 %v378_v36, %s2027_s4 }
 0x23c   :  { %v383_v63 = vpop.permute.xlu0 %382 }
 0x23d   :  { %1640 = vmatprep.mubr.msk.f32.mxu1 %vm407_vm2, %v383_v63  ;;  %v389_v2 = vpop.permute.xlu1 %388  ;;  %v1938_v63 = vpack.c.bf16 %v782_v62, %v781_v61 }
 0x240   :  { %v385_v1 = vpop.permute.xlu0 %384 }
 0x241   :  { %1641 = vmatmul.mubr.msk.f32.gmra.mrb[6].mxu1 %vm407_vm2, %v385_v1  ;;  %v391_v7 = vpop.permute.xlu1 %390  ;;  %v760_v1 = vld [vmem:[%s2624_s9 + $0x88] sm:$0xff] }
 0x242   :  { %1643 = vmatprep.mubr.msk.f32.mxu1 %vm407_vm2, %v375_v32  ;;  %v1894_v3 = vpack.c.bf16 %v760_v1, %v759_v0 }
 0x244   :  { %1895 = vmatprep.subr.bf16.mxu1 %v1894_v3 }
 0x245   :  { %1644 = vmatmul.mubr.msk.f32.gmra.mrb[8].mxu1 %vm407_vm2, %v378_v36 }
 0x246   :  { %1646 = vmatprep.mubr.msk.f32.mxu1 %vm407_vm2, %v389_v2  ;;  %v743_v2 = vld [vmem:[%s2624_s9] sm:$0xff] }
 0x249   :  { %1647 = vmatmul.mubr.msk.f32.gmra.mrb[10].mxu1 %vm407_vm2, %v391_v7  ;;  %v1896_v7 = vpack.c.bf16 %v744_v4, %v743_v2 }
 0x24a   :  { %1649 = vmatprep.mubr.msk.f32.mxu1 %vm407_vm2, %v376_v6  ;;  %v762_v6 = vld [vmem:[%s2624_s9 + $0x98] sm:$0xff] }
 0x24b   :  { %1897 = vmatpush3.bf16.msra.mxu1 %v1896_v7 }
 0x24d   :  { %1650 = vmatmul.mubr.msk.f32.gmra.mrb[12].mxu1 %vm407_vm2, %v379_v8  ;;  %v1898_v8 = vpack.c.bf16 %v762_v6, %v761_v5 }
 0x24f   :  { %1899 = vmatprep.subr.bf16.mxu1 %v1898_v8 }
 0x2a1   :  { %v1639_v10 = vpop.f32.mrb[4].mxu1 }
 0x2a2   :  { %v502_v11 = vadd.f32 %v1639_v10, %v1407_v9  ;;  %v496_v12 = vpop.f32.mrb[5].mxu1  ;;  %v746_v10 = vld [vmem:[%s2624_s9 + $0x18] sm:$0xff] }
 0x2a3   :  { %v497_v13 = vadd.f32 %v1407_v9, %v496_v12  ;;  %v764_v12 = vld [vmem:[%s2624_s9 + $0xa8] sm:$0xff] }
 0x2a4   :  { %v546_v14 = vmul.f32 0.01, %v502_v11 }
 0x2a5   :  { %v545_v15 = vmul.f32 0.01, %v497_v13 }
 0x2a6   :  { %v556_v17 = vmax.f32 %v502_v11, %v546_v14  ;;  %v763_v11 = vld [vmem:[%s2624_s9 + $0xa0] sm:$0xff] }
 0x2a7   :  { %v555_v16 = vmax.f32 %v497_v13, %v545_v15  ;;  %v1902_v14 = vpack.c.bf16 %v764_v12, %v763_v11  ;;  %v747_v15 = vld [vmem:[%s2624_s9 + $0x20] sm:$0xff] }
 0x2a9   :  { %1684 = vmatprep.mubr.f32.mxu0 %v555_v16  ;;  %v748_v16 = vld [vmem:[%s2624_s9 + $0x28] sm:$0xff] }
 0x2aa   :  { %1685 = vmatmul.mubr.f32.vlgmr.msra.gmra.mrb[4].mxu0 %v556_v17  ;;  %v765_v17 = vld [vmem:[%s2624_s9 + $0xb0] sm:$0xff] }
 0x2ab   :  { %1929 = vmatpush3.bf16.msra.mxu0 %v1926_v52 }
 0x2ac   :  { %1931 = vmatprep.subr.bf16.mxu0 %v1930_v55 }
 0x2af   :  { %1933 = vmatpush3.bf16.msra.mxu0 %v1930_v55 }
 0x2b0   :  { %1935 = vmatprep.subr.bf16.mxu0 %v1934_v58 }
 0x2b3   :  { %1937 = vmatpush3.bf16.msra.mxu0 %v1934_v58 }
 0x2b4   :  { %1939 = vmatprep.subr.bf16.mxu0 %v1938_v63 }
 0x2b7   :  { %1941 = vmatpush3.bf16.msra.mxu0 %v1938_v63 }
 0x314   :  { %v1642_v18 = vpop.f32.mrb[6].mxu1 }
 0x315   :  { %v512_v19 = vadd.f32 %v1642_v18, %v1407_v9  ;;  %v506_v20 = vpop.f32.mrb[7].mxu1  ;;  %v766_v18 = vld [vmem:[%s2624_s9 + $0xb8] sm:$0xff] }
 0x316   :  { %v507_v21 = vadd.f32 %v1407_v9, %v506_v20  ;;  %v1906_v20 = vpack.c.bf16 %v766_v18, %v765_v17 }
 0x317   :  { %v548_v22 = vmul.f32 0.01, %v512_v19 }
 0x318   :  { %v547_v23 = vmul.f32 0.01, %v507_v21  ;;  %v1645_v24 = vpop.f32.mrb[8].mxu1 }
 0x319   :  { %v522_v25 = vadd.f32 %v1645_v24, %v1407_v9  ;;  %v516_v26 = vpop.f32.mrb[9].mxu1  ;;  %v558_v29 = vmax.f32 %v512_v19, %v548_v22  ;;  %v1904_v19 = vpack.c.bf16 %v748_v16, %v747_v15  ;;  %v750_v22 = vld [vmem:[%s2624_s9 + $0x38] sm:$0xff]  ;;  %v768_v24 = vld [vmem:[%s2624_s9 + $0xc8] sm:$0xff] }
 0x31a   :  { %v557_v27 = vmax.f32 %v507_v21, %v547_v23  ;;  %v517_v28 = vadd.f32 %v1407_v9, %v516_v26  ;;  %v749_v21 = vld [vmem:[%s2624_s9 + $0x30] sm:$0xff]  ;;  %v767_v23 = vld [vmem:[%s2624_s9 + $0xc0] sm:$0xff] }
 0x31b   :  { %v550_v30 = vmul.f32 0.01, %v522_v25  ;;  %v1910_v26 = vpack.c.bf16 %v768_v24, %v767_v23 }
 0x31c   :  { %v549_v31 = vmul.f32 0.01, %v517_v28  ;;  %v1648_v32 = vpop.f32.mrb[10].mxu1  ;;  %1687 = vmatprep.mubr.f32.mxu0 %v557_v27  ;;  %v751_v27 = vld [vmem:[%s2624_s9 + $0x40] sm:$0xff] }
 0x31d   :  { %v532_v33 = vadd.f32 %v1648_v32, %v1407_v9  ;;  %v526_v34 = vpop.f32.mrb[11].mxu1  ;;  %1688 = vmatmul.mubr.f32.gmra.mrb[6].mxu0 %v558_v29  ;;  %v560_v37 = vmax.f32 %v522_v25, %v550_v30  ;;  %v1908_v25 = vpack.c.bf16 %v750_v22, %v749_v21  ;;  %v769_v29 = vld [vmem:[%s2624_s9 + $0xd0] sm:$0xff]  ;;  %v770_v30 = vld [vmem:[%s2624_s9 + $0xd8] sm:$0xff] }
 0x31e   :  { %v559_v35 = vmax.f32 %v517_v28, %v549_v31  ;;  %v527_v36 = vadd.f32 %v1407_v9, %v526_v34  ;;  %v752_v28 = vld [vmem:[%s2624_s9 + $0x48] sm:$0xff]  ;;  %v1914_v32 = vpack.c.bf16 %v770_v30, %v769_v29  ;;  %v754_v34 = vld [vmem:[%s2624_s9 + $0x58] sm:$0xff] }
 0x31f   :  { %v552_v38 = vmul.f32 0.01, %v532_v33  ;;  %v1912_v31 = vpack.c.bf16 %v752_v28, %v751_v27 }
 0x320   :  { %v551_v39 = vmul.f32 0.01, %v527_v36  ;;  %v1651_v40 = vpop.f32.mrb[12].mxu1  ;;  %1690 = vmatprep.mubr.f32.mxu0 %v559_v35  ;;  %v771_v35 = vld [vmem:[%s2624_s9 + $0xe0] sm:$0xff] }
 0x321   :  { %v542_v41 = vadd.f32 %v1651_v40, %v1407_v9  ;;  %v536_v42 = vpop.f32.mrb[13].mxu1  ;;  %1691 = vmatmul.mubr.f32.gmra.mrb[8].mxu0 %v560_v37  ;;  %v562_v45 = vmax.f32 %v532_v33, %v552_v38  ;;  %v753_v33 = vld [vmem:[%s2624_s9 + $0x50] sm:$0xff]  ;;  %v756_v40 = vld [vmem:[%s2624_s9 + $0x68] sm:$0xff] }
 0x322   :  { %v561_v43 = vmax.f32 %v527_v36, %v551_v39  ;;  %v537_v44 = vadd.f32 %v1407_v9, %v536_v42  ;;  %v745_v9 = vld [vmem:[%s2624_s9 + $0x10] sm:$0xff]  ;;  %v772_v36 = vld [vmem:[%s2624_s9 + $0xe8] sm:$0xff]  ;;  %v1916_v37 = vpack.c.bf16 %v754_v34, %v753_v33  ;;  %v755_v39 = vld [vmem:[%s2624_s9 + $0x60] sm:$0xff] }
 0x323   :  { %v554_v46 = vmul.f32 0.01, %v542_v41  ;;  %v1900_v13 = vpack.c.bf16 %v746_v10, %v745_v9  ;;  %v1918_v38 = vpack.c.bf16 %v772_v36, %v771_v35  ;;  %v950_v35 = vld [vmem:[%s2626_s11] sm:$0xff]  ;;  %v951_v36 = vld [vmem:[%s2626_s11 + $0x8] sm:$0xff] }
 0x324   :  { %v553_v47 = vmul.f32 0.01, %v537_v44  ;;  %1693 = vmatprep.mubr.f32.mxu0 %v561_v43 }
 0x325   :  { %1694 = vmatmul.mubr.f32.gmra.mrb[10].mxu0 %v562_v45  ;;  %v564_v49 = vmax.f32 %v542_v41, %v554_v46  ;;  %1901 = vmatpush3.bf16.msra.mxu1 %v1900_v13  ;;  %v1920_v41 = vpack.c.bf16 %v756_v40, %v755_v39  ;;  %v774_v45 = vld [vmem:[%s2624_s9 + $0xf8] sm:$0xff]  ;;  %v1045_v40 = vld [vmem:[%s2627_s13] sm:$0xff] }
 0x326   :  { %v563_v48 = vmax.f32 %v537_v44, %v553_v47  ;;  %1903 = vmatprep.subr.bf16.mxu1 %v1902_v14  ;;  %v773_v44 = vld [vmem:[%s2624_s9 + $0xf0] sm:$0xff] }
 0x327   :  { %v1922_v46 = vpack.c.bf16 %v774_v45, %v773_v44  ;;  %v757_v47 = vld [vmem:[%s2624_s9 + $0x70] sm:$0xff]  ;;  %v1419_v44 = vld [vmem:[%s2628_s10] ss:$0 sm:$0xff] }
 0x328   :  { %1696 = vmatprep.mubr.f32.mxu0 %v563_v48  ;;  %v758_v48 = vld [vmem:[%s2624_s9 + $0x78] sm:$0xff] }
 0x329   :  { %1697 = vmatmul.mubr.f32.gmra.mrb[12].mxu0 %v564_v49  ;;  %1905 = vmatpush3.bf16.msra.mxu1 %v1904_v19  ;;  %v1418_v49 = vld [vmem:[%s2625_s8] ss:$0 sm:$0xff]  ;;  %v1924_v51 = vpack.c.bf16 %v758_v48, %v757_v47 }
 0x32a   :  { %1907 = vmatprep.subr.bf16.mxu1 %v1906_v20 }
 0x32d   :  { %1909 = vmatpush3.bf16.msra.mxu1 %v1908_v25 }
 0x32e   :  { %1911 = vmatprep.subr.bf16.mxu1 %v1910_v26 }
 0x331   :  { %1913 = vmatpush3.bf16.msra.mxu1 %v1912_v31 }
 0x332   :  { %1915 = vmatprep.subr.bf16.mxu1 %v1914_v32 }
 0x335   :  { %1917 = vmatpush3.bf16.msra.mxu1 %v1916_v37  ;;  %v1942_v37 = vpack.c.bf16 %v951_v36, %v950_v35  ;;  %v1247_v36 = vld [vmem:[%s2631_s17] sm:$0xff] }
 0x336   :  { %1919 = vmatprep.subr.bf16.mxu1 %v1918_v38 }
 0x339   :  { %1921 = vmatpush3.bf16.msra.mxu1 %v1920_v41  ;;  %v1046_v41 = vld [vmem:[%s2627_s13 + $0x8] sm:$0xff] }
 0x33a   :  { %1923 = vmatprep.subr.bf16.mxu1 %v1922_v46 }
 0x33d   :  { %1925 = vmatpush3.bf16.msra.mxu1 %v1924_v51 }
 0x33e   :  { %1943 = vmatprep.subr.bf16.mxu1 %v1942_v37 }
 0x37d   :  { %v2370_v59 = vpop.f32.mrb[4].mxu0 }
 0x37e   :  { %v2372_v60 = vpop.f32.mrb[5].mxu0  ;;  %v660_v20 = vadd.f32 %v2370_v59, %v1418_v49 }
 0x37f   :  { %v655_v15 = vadd.f32 %v1418_v49, %v2372_v60 }
 0x380   :  { %v704_v29 = vmul.f32 0.01, %v660_v20 }
 0x381   :  { %v703_v18 = vmul.f32 0.01, %v655_v15 }
 0x382   :  { %v714_v59 = vmax.f32 %v660_v20, %v704_v29  ;;  %v1155_v20 = vld [vmem:[%s2629_s15 + $0x50] sm:$0xff] }
 0x383   :  { %v713_v23 = vmax.f32 %v655_v15, %v703_v18  ;;  %v1152_v15 = vld [vmem:[%s2629_s15 + $0x38] sm:$0xff]  ;;  %v1154_v18 = vld [vmem:[%s2629_s15 + $0x48] sm:$0xff] }
 0x3f0   :  { %v1689_v42 = vpop.f32.mrb[6].mxu0 }
 0x3f1   :  { %v664_v43 = vpop.f32.mrb[7].mxu0  ;;  %v670_v52 = vadd.f32 %v1689_v42, %v1418_v49  ;;  %v1946_v42 = vpack.c.bf16 %v1046_v41, %v1045_v40  ;;  %v1250_v40 = vld [vmem:[%s2631_s17 + $0x18] sm:$0xff] }
 0x3f2   :  { %v665_v54 = vadd.f32 %v1418_v49, %v664_v43 }
 0x3f3   :  { %v706_v56 = vmul.f32 0.01, %v670_v52 }
 0x3f4   :  { %v1692_v50 = vpop.f32.mrb[8].mxu0  ;;  %v705_v61 = vmul.f32 0.01, %v665_v54 }
 0x3f5   :  { %v674_v53 = vpop.f32.mrb[9].mxu0  ;;  %v716_v2 = vmax.f32 %v670_v52, %v706_v56  ;;  %v680_v17 = vadd.f32 %v1692_v50, %v1418_v49  ;;  %v1047_v56 = vld [vmem:[%s2627_s13 + $0x10] sm:$0xff] }
 0x3f6   :  { %v715_v6 = vmax.f32 %v665_v54, %v705_v61  ;;  %v675_v16 = vadd.f32 %v1418_v49, %v674_v53 }
 0x3f7   :  { %v708_v21 = vmul.f32 0.01, %v680_v17 }
 0x3f8   :  { %v1695_v55 = vpop.f32.mrb[10].mxu0  ;;  %v707_v19 = vmul.f32 0.01, %v675_v16 }
 0x3f9   :  { %v690_v57 = vadd.f32 %v1695_v55, %v1418_v49  ;;  %v684_v58 = vpop.f32.mrb[11].mxu0  ;;  %v718_v30 = vmax.f32 %v680_v17, %v708_v21  ;;  %v1153_v17 = vld [vmem:[%s2629_s15 + $0x40] sm:$0xff]  ;;  %v1156_v21 = vld [vmem:[%s2629_s15 + $0x58] sm:$0xff] }
 0x3fa   :  { %v685_v62 = vadd.f32 %v1418_v49, %v684_v58  ;;  %v717_v25 = vmax.f32 %v675_v16, %v707_v19  ;;  %v1978_v19 = vpack.c.bf16 %v1154_v18, %v1153_v17 }
 0x3fb   :  { %v710_v63 = vmul.f32 0.01, %v690_v57 }
 0x3fc   :  { %v709_v0 = vmul.f32 0.01, %v685_v62  ;;  %v1698_v1 = vpop.f32.mrb[12].mxu0 }
 0x3fd   :  { %v720_v3 = vmax.f32 %v690_v57, %v710_v63  ;;  %v700_v4 = vadd.f32 %v1698_v1, %v1418_v49  ;;  %v694_v5 = vpop.f32.mrb[13].mxu0  ;;  %v1048_v57 = vld [vmem:[%s2627_s13 + $0x18] sm:$0xff]  ;;  %v1049_v63 = vld [vmem:[%s2627_s13 + $0x20] sm:$0xff] }
 0x3fe   :  { %v719_v7 = vmax.f32 %v685_v62, %v709_v0  ;;  %v695_v8 = vadd.f32 %v1418_v49, %v694_v5  ;;  %v1950_v62 = vpack.c.bf16 %v1048_v57, %v1047_v56  ;;  %v1050_v0 = vld [vmem:[%s2627_s13 + $0x28] sm:$0xff]  ;;  %v1145_v5 = vld [vmem:[%s2629_s15] sm:$0xff] }
 0x3ff   :  { %v712_v9 = vmul.f32 0.01, %v700_v4  ;;  %v2017_v10 = vpack.i.bf16 %v716_v2, %v720_v3  ;;  %v1954_v1 = vpack.c.bf16 %v1050_v0, %v1049_v63  ;;  %v1051_v2 = vld [vmem:[%s2627_s13 + $0x30] sm:$0xff]  ;;  %v1052_v3 = vld [vmem:[%s2627_s13 + $0x38] sm:$0xff]  ;;  %v1428_v57 = vld [vmem:[%s2633_s16] ss:$0 sm:$0xff] }
 0x400   :  { %v711_v11 = vmul.f32 0.01, %v695_v8  ;;  %v2012_v12 = vpack.i.bf16 %v715_v6, %v719_v7  ;;  %v1146_v6 = vld [vmem:[%s2629_s15 + $0x8] sm:$0xff]  ;;  %v1147_v7 = vld [vmem:[%s2629_s15 + $0x10] sm:$0xff] }
 0x401   :  { %2018 = vrot.lane.b32.xlu1 %v2017_v10, %s2027_s4  ;;  %v722_v14 = vmax.f32 %v700_v4, %v712_v9  ;;  %v1958_v4 = vpack.c.bf16 %v1052_v3, %v1051_v2  ;;  %v1148_v9 = vld [vmem:[%s2629_s15 + $0x18] sm:$0xff] }
 0x402   :  { %v721_v13 = vmax.f32 %v695_v8, %v711_v11  ;;  %2013 = vrot.lane.b32.xlu0 %v2012_v12, %s2027_s4  ;;  %v1962_v8 = vpack.c.bf16 %v1146_v6, %v1145_v5  ;;  %v1966_v10 = vpack.c.bf16 %v1148_v9, %v1147_v7  ;;  %v1149_v11 = vld [vmem:[%s2629_s15 + $0x20] sm:$0xff]  ;;  %v1150_v12 = vld [vmem:[%s2629_s15 + $0x28] sm:$0xff] }
 0x404   :  { %1715 = vmatprep.mubr.msk.f32.mxu0 %vm407_vm2, %v721_v13  ;;  %1963 = vmatprep.subr.bf16.mxu0 %v1962_v8  ;;  %v1970_v13 = vpack.c.bf16 %v1150_v12, %v1149_v11 }
 0x405   :  { %1716 = vmatmul.mubr.msk.f32.vlgmr.msra.gmra.mrb[14].mxu0 %vm407_vm2, %v722_v14  ;;  %v1151_v14 = vld [vmem:[%s2629_s15 + $0x30] sm:$0xff] }
 0x406   :  { %1965 = vmatpush3.bf16.msra.mxu0 %v1962_v8  ;;  %v1974_v16 = vpack.c.bf16 %v1152_v15, %v1151_v14 }
 0x407   :  { %1967 = vmatprep.subr.bf16.mxu0 %v1966_v10 }
 0x40a   :  { %1969 = vmatpush3.bf16.msra.mxu0 %v1966_v10 }
 0x40b   :  { %1971 = vmatprep.subr.bf16.mxu0 %v1970_v13 }
 0x40e   :  { %1973 = vmatpush3.bf16.msra.mxu0 %v1970_v13 }
 0x40f   :  { %1975 = vmatprep.subr.bf16.mxu0 %v1974_v16 }
 0x412   :  { %1977 = vmatpush3.bf16.msra.mxu0 %v1974_v16 }
 0x413   :  { %1979 = vmatprep.subr.bf16.mxu0 %v1978_v19 }
 0x416   :  { %1981 = vmatpush3.bf16.msra.mxu0 %v1978_v19 }
 0x473   :  { %v2019_v22 = vpop.permute.xlu1 %2018 }
 0x474   :  { %v2014_v24 = vpop.permute.xlu0 %2013  ;;  %v2020_v26 = vunpack.i.l.bf16 %v2019_v22  ;;  %v2021_v32 = vunpack.i.h.bf16 %v2019_v22  ;;  %v1982_v22 = vpack.c.bf16 %v1156_v21, %v1155_v20 }
 0x475   :  { %v2016_v27 = vunpack.i.h.bf16 %v2014_v24  ;;  %v2015_v28 = vunpack.i.l.bf16 %v2014_v24 }
 0x476   :  { %v742_v33 = vsel %vm407_vm2, %v718_v30, %v2020_v26  ;;  %v740_v34 = vsel %vm407_vm2, %v714_v59, %v2021_v32  ;;  %1983 = vmatprep.subr.bf16.mxu0 %v1982_v22  ;;  %v1158_v32 = vld [vmem:[%s2629_s15 + $0x68] sm:$0xff]  ;;  %v1159_v59 = vld [vmem:[%s2629_s15 + $0x70] sm:$0xff] }
 0x477   :  { %v741_v31 = vsel %vm407_vm2, %v717_v25, %v2015_v28  ;;  %v739_v60 = vsel %vm407_vm2, %v713_v23, %v2016_v27  ;;  %1985 = vmatpush3.bf16.msra.mxu0 %v1982_v22  ;;  %v1422_v23 = vld [vmem:[%s2630_s12] ss:$0 sm:$0xff] }
 0x478   :  { %860 = vmatprep.mubr.f32.mxu1 %v741_v31 }
 0x479   :  { %861 = vmatmul.mubr.f32.vlgmr.msra.gmra.mrb[14].mxu1 %v739_v60  ;;  %v1157_v60 = vld [vmem:[%s2629_s15 + $0x60] sm:$0xff] }
 0x47a   :  { %865 = vmatprep.mubr.f32.mxu1 %v742_v33  ;;  %1945 = vmatpush3.bf16.msra.mxu1 %v1942_v37  ;;  %v1986_v33 = vpack.c.bf16 %v1158_v32, %v1157_v60  ;;  %v1248_v37 = vld [vmem:[%s2631_s17 + $0x8] sm:$0xff] }
 0x47b   :  { %1947 = vmatprep.subr.bf16.mxu1 %v1946_v42 }
 0x47c   :  { %1987 = vmatprep.subr.bf16.mxu0 %v1986_v33 }
 0x47d   :  { %866 = vmatmul.mubr.f32.gmra.mrb[16].mxu1 %v740_v34  ;;  %1989 = vmatpush3.bf16.msra.mxu0 %v1986_v33  ;;  %v1160_v34 = vld [vmem:[%s2629_s15 + $0x78] sm:$0xff] }
 0x47e   :  { %v1990_v35 = vpack.c.bf16 %v1160_v34, %v1159_v59 }
 0x480   :  { %1991 = vmatprep.subr.bf16.mxu0 %v1990_v35 }
 0x481   :  { %1993 = vmatpush3.bf16.msra.mxu0 %v1990_v35 }
 0x4d8   :  { %v1717_v38 = vpop.f32.mrb[14].mxu0 }
 0x4d9   :  { %v937_v39 = vpop.f32.mrb[15].mxu0 }
 0x54c   :  { %v1527_v43 = vpop.f32.mrb[14].mxu1 }
 0x54d   :  { %v1528_v45 = vpop.f32.mrb[15].mxu1 }
 0x54e   :  { %v1529_v46 = vadd.f32 %v1528_v45, %v1527_v43 }
 0x550   :  { %v863_v47 = vadd.f32 %v1529_v46, %v1419_v44  ;;  %v1530_v48 = vpop.f32.mrb[16].mxu1 }
 0x551   :  { %v1531_v49 = vpop.f32.mrb[17].mxu1 }
 0x552   :  { %v938_v50 = vadd.f32 %v937_v39, %v863_v47  ;;  %v1532_v51 = vadd.f32 %v1531_v49, %v1530_v48  ;;  %v1994_v39 = vpack.c.bf16 %v1248_v37, %v1247_v36 }
 0x554   :  { %v946_v52 = vmul.f32 0.01, %v938_v50  ;;  %v868_v53 = vadd.f32 %v1532_v51, %v1419_v44  ;;  %v1251_v51 = vld [vmem:[%s2631_s17 + $0x20] sm:$0xff] }
 0x556   :  { %v948_v54 = vmax.f32 %v938_v50, %v946_v52  ;;  %v943_v55 = vadd.f32 %v1717_v38, %v868_v53  ;;  %v1249_v38 = vld [vmem:[%s2631_s17 + $0x10] sm:$0xff]  ;;  %v1252_v52 = vld [vmem:[%s2631_s17 + $0x28] sm:$0xff] }
 0x557   :  { %v1998_v41 = vpack.c.bf16 %v1250_v40, %v1249_v38  ;;  %v2002_v53 = vpack.c.bf16 %v1252_v52, %v1251_v51 }
 0x558   :  { %v947_v58 = vmul.f32 0.01, %v943_v55  ;;  %1722 = vmatprep.mubr.msk.f32.mxu1 %vm959_vm3, %v948_v54  ;;  %v1253_v54 = vld [vmem:[%s2631_s17 + $0x30] sm:$0xff] }
 0x55a   :  { %v949_v61 = vmax.f32 %v943_v55, %v947_v58  ;;  %v1254_v55 = vld [vmem:[%s2631_s17 + $0x38] sm:$0xff] }
 0x55b   :  { %v2006_v56 = vpack.c.bf16 %v1254_v55, %v1253_v54 }
 0x55c   :  { %1723 = vmatmul.mubr.msk.f32.vlgmr.msra.gmra.mrb[18].mxu1 %vm959_vm3, %v949_v61 }
 0x55d   :  { %1949 = vmatpush3.bf16.msra.mxu1 %v1946_v42  ;;  %v1425_v42 = vld [vmem:[%s2632_s14] ss:$0 sm:$0xff] }
 0x55e   :  { %1951 = vmatprep.subr.bf16.mxu1 %v1950_v62 }
 0x561   :  { %1953 = vmatpush3.bf16.msra.mxu1 %v1950_v62 }
 0x562   :  { %1955 = vmatprep.subr.bf16.mxu1 %v1954_v1 }
 0x565   :  { %1957 = vmatpush3.bf16.msra.mxu1 %v1954_v1 }
 0x566   :  { %1959 = vmatprep.subr.bf16.mxu1 %v1958_v4 }
 0x569   :  { %1961 = vmatpush3.bf16.msra.mxu1 %v1958_v4  ;;  %v1429_v4 = vld [vmem:[%s2634_s18] ss:$0 sm:$0xff] }
 0x56a   :  { %1995 = vmatprep.subr.bf16.mxu1 %v1994_v39 }
 0x62f   :  { %v1724_v24 = vpop.f32.mrb[18].mxu1 }
 0x630   :  { %v1038_v25 = vadd.f32 %v1724_v24, %v1422_v23  ;;  %v1032_v26 = vpop.f32.mrb[19].mxu1 }
 0x631   :  { %v1033_v27 = vadd.f32 %v1422_v23, %v1032_v26 }
 0x632   :  { %v1042_v28 = vmul.f32 0.01, %v1038_v25 }
 0x633   :  { %v1041_v29 = vmul.f32 0.01, %v1033_v27 }
 0x634   :  { %v1044_v31 = vmax.f32 %v1038_v25, %v1042_v28 }
 0x635   :  { %v1043_v30 = vmax.f32 %v1033_v27, %v1041_v29 }
 0x637   :  { %1741 = vmatprep.mubr.msk.f32.mxu1 %vm407_vm2, %v1043_v30 }
 0x638   :  { %1742 = vmatmul.mubr.msk.f32.vlgmr.msra.gmra.mrb[20].mxu1 %vm407_vm2, %v1044_v31 }
 0x639   :  { %1997 = vmatpush3.bf16.msra.mxu1 %v1994_v39 }
 0x63a   :  { %1999 = vmatprep.subr.bf16.mxu1 %v1998_v41 }
 0x63d   :  { %2001 = vmatpush3.bf16.msra.mxu1 %v1998_v41 }
 0x63e   :  { %2003 = vmatprep.subr.bf16.mxu1 %v2002_v53 }
 0x641   :  { %2005 = vmatpush3.bf16.msra.mxu1 %v2002_v53 }
 0x642   :  { %2007 = vmatprep.subr.bf16.mxu1 %v2006_v56 }
 0x645   :  { %2009 = vmatpush3.bf16.msra.mxu1 %v2006_v56 }
 0x70b   :  { %v1743_v43 = vpop.f32.mrb[20].mxu1 }
 0x70c   :  { %v1138_v44 = vadd.f32 %v1743_v43, %v1425_v42  ;;  %v1132_v45 = vpop.f32.mrb[21].mxu1 }
 0x70d   :  { %v1133_v46 = vadd.f32 %v1425_v42, %v1132_v45 }
 0x70e   :  { %v1142_v47 = vmul.f32 0.01, %v1138_v44 }
 0x70f   :  { %v1141_v48 = vmul.f32 0.01, %v1133_v46 }
 0x710   :  { %v1144_v50 = vmax.f32 %v1138_v44, %v1142_v47 }
 0x711   :  { %v1143_v49 = vmax.f32 %v1133_v46, %v1141_v48 }
 0x713   :  { %1776 = vmatprep.mubr.f32.mxu0 %v1143_v49 }
 0x714   :  { %1777 = vmatmul.mubr.f32.vlgmr.msra.gmra.mrb[16].mxu0 %v1144_v50 }
 0x7e7   :  { %v1778_v58 = vpop.f32.mrb[16].mxu0 }
 0x7e8   :  { %v1240_v61 = vadd.f32 %v1778_v58, %v1428_v57  ;;  %v1234_v62 = vpop.f32.mrb[17].mxu0 }
 0x7e9   :  { %v1235_v63 = vadd.f32 %v1428_v57, %v1234_v62 }
 0x7ea   :  { %v1244_v0 = vmul.f32 0.01, %v1240_v61 }
 0x7eb   :  { %v1243_v1 = vmul.f32 0.01, %v1235_v63 }
 0x7ec   :  { %v1246_v3 = vmax.f32 %v1240_v61, %v1244_v0 }
 0x7ed   :  { %v1245_v2 = vmax.f32 %v1235_v63, %v1243_v1 }
 0x7ef   :  { %1795 = vmatprep.mubr.msk.f32.mxu1 %vm407_vm2, %v1245_v2 }
 0x7f0   :  { %1796 = vmatmul.mubr.msk.f32.vlgmr.msra.gmra.mrb[22].mxu1 %vm407_vm2, %v1246_v3 }
 0x8c3   :  { %v1797_v5 = vpop.f32.mrb[22].mxu1 }
 0x8c4   :  { %v1334_v6 = vpop.f32.mrb[23].mxu1  ;;  %v1340_v8 = vadd.f32 %v1797_v5, %v1429_v4 }
 0x8c5   :  { %v1335_v7 = vadd.f32 %v1429_v4, %v1334_v6 }
 0x8c7   :  { %1343 = vxpose.xlu0.b32.start [1/2] (short) (narrow) %v1335_v7, 8 }
 0x8cb   :  { %1344 = vxpose.xlu0.b32.end [2/2] (short) (narrow) %v1340_v8, 8 }
 0x947   :  { %v1359_v9 = vpop.trf.xlu0 }
 0x948   :  { %v1376_v10 = vsel %vm1375_vm4, %v1359_v9, -inf }
 0x949   :  { %v1377_v11 = vrot.slane %v1376_v10, 4 }
 0x94b   :  { %v1378_v12 = vmax.f32 %v1376_v10, %v1377_v11 }
 0x94d   :  { %v1379_v13 = vrot.slane %v1378_v12, 2 }
 0x94f   :  { %v1380_v14 = vmax.f32 %v1378_v12, %v1379_v13 }
 0x951   :  { %v1381_v15 = vrot.slane %v1380_v14, 1 }
 0x953   :  { %v1382_v16 = vmax.f32 %v1380_v14, %v1381_v15 }
 0x955   :  { %v1383_v17 = vsub.f32 %v1359_v9, %v1382_v16 }
 0x957   :  { %v1384_v18 = vmul.f32 1.442695, %v1383_v17 }
 0x959   :  { %2022 = vpow2.f32 %v1384_v18 }
 0x963   :  { %v2023_v19 = vpop.eup %2022 }
 0x964   :  { %v1386_v20 = vsel %vm1375_vm4, %v2023_v19, 0.0 }
 0x965   :  { %v1387_v21 = vrot.slane %v1386_v20, 4 }
 0x967   :  { %v1388_v22 = vadd.f32 %v1387_v21, %v1386_v20 }
 0x969   :  { %v1389_v23 = vrot.slane %v1388_v22, 2 }
 0x96b   :  { %v1390_v24 = vadd.f32 %v1389_v23, %v1388_v22 }
 0x96d   :  { %v1391_v25 = vrot.slane %v1390_v24, 1 }
 0x96f   :  { %v1392_v26 = vadd.f32 %v1391_v25, %v1390_v24 }
 0x971   :  { %2024 = vrcp.f32 %v1392_v26 }
 0x97b   :  { %v2025_v27 = vpop.eup %2024 }
 0x97c   :  { %v1394_v28 = vmul.f32 %v2025_v27, %v2023_v19 }
 0x97e   :  { %1395 = vst.msk [vmem:[%s2635_s19] sm:$0x1f] %vm1375_vm4, %v1394_v28 }

</bundles_post_ra>
